<compile_context>
chip_gen: v6e
topology: v6e:2x2x1
jax: 0.10.0
libtpu: 0.0.40
codegen_flags: <defaults>
</compile_context>

<pallas_src>
import jax
import jax.numpy as jnp
from jax.experimental import pallas as pl
from jax.experimental.pallas import tpu as pltpu


def _round_up(x, m):
    return ((x + m - 1) // m) * m


# -----------------------------------------------------------------------------
# Kernel body: one batch tile of   relu(relu(x @ W1 + b1) @ W2 + b2)
# -----------------------------------------------------------------------------
def mlp_kernel(x_ref, w1_ref, b1_ref, w2_ref, b2_ref, o_ref):
    # x arrives as f32 straight from the caller (no padded bf16 copy in HBM);
    # cast to bf16 in-VMEM so both matmuls run as bf16 MXU ops with f32 acc.
    x = x_ref[...].astype(jnp.bfloat16)
    h = jnp.dot(x, w1_ref[...], preferred_element_type=jnp.float32)
    h = jnp.maximum(h + b1_ref[...], 0.0)                      # bias + ReLU in f32
    o = jnp.dot(h.astype(jnp.bfloat16), w2_ref[...],
                preferred_element_type=jnp.float32)
    o = jnp.maximum(o + b2_ref[...], 0.0)
    o_ref[...] = o.astype(o_ref.dtype)


# -----------------------------------------------------------------------------
# One-time parameter prep (hoisted out of the per-call forward path).
# -----------------------------------------------------------------------------
def prepare_params(w1, b1, w2, b2):
    """Pad lane dims to 128 and cast weights to bf16 ONCE.

    w1: (d_in, hidden)   b1: (hidden,)  or (1, hidden)
    w2: (hidden, d_out)  b2: (d_out,)   or (1, d_out)
    Weights are already transposed from PyTorch's (out, in) layout, so the
    kernel computes plain x @ W (identical math to nn.Linear).

    Zero padding is exact: padded hidden lanes get bias 0 -> relu(0) = 0 and
    only multiply zero rows of W2; padded output lanes are sliced off.
    """
    d_in, hidden = w1.shape
    d_out = w2.shape[1]
    hid_p = _round_up(hidden, 128)
    d_out_p = _round_up(d_out, 128)

    f32, bf16 = jnp.float32, jnp.bfloat16
    w1_p = jnp.zeros((d_in, hid_p), bf16).at[:, :hidden].set(w1.astype(bf16))
    b1_p = jnp.zeros((1, hid_p), f32).at[:, :hidden].set(
        b1.reshape(1, hidden).astype(f32))
    w2_p = jnp.zeros((hid_p, d_out_p), bf16).at[:hidden, :d_out].set(w2.astype(bf16))
    b2_p = jnp.zeros((1, d_out_p), f32).at[:, :d_out].set(
        b2.reshape(1, d_out).astype(f32))
    return {"w1": w1_p, "b1": b1_p, "w2": w2_p, "b2": b2_p, "d_out": d_out}


def _pick_batch_tile(B, d_in, hid_p, d_out_p, out_itemsize, batch_tile):
    """Batch tile: multiple of 16, large (<=2048), VMEM-safe, >=2 steps if possible."""
    # Double-buffered x (f32) + double-buffered out + f32 hidden temp per row.
    bytes_per_row = 2 * d_in * 4 + 2 * d_out_p * out_itemsize + hid_p * 4
    # Stay well under v5e's 16 MiB default scoped VMEM (v6e/v7x have headroom).
    max_tb = max(16, ((12 * 1024 * 1024 // bytes_per_row) // 16) * 16)
    if batch_tile is None:
        # Aim for at least 2 grid steps (dual-TC on v7x) but big steps (<=2048)
        # so the ~0.35us/step pipeline overhead is amortized.
        batch_tile = min(2048, _round_up((B + 1) // 2, 16))
    tb = max(16, (min(batch_tile, max_tb) // 16) * 16)
    if tb >= B:
        tb = B  # single full-extent block; any B is a legal block dim here
    return tb


# -----------------------------------------------------------------------------
# Forward pass.
# -----------------------------------------------------------------------------
def fashion_mnist_model_v1(x_nchw, params, *, batch_tile=None,
                           out_dtype=jnp.float32):
    """x_nchw: (B, C, H, W) float32.  Returns (B, d_out) in `out_dtype`."""
    w1_p, b1_p = params["w1"], params["b1"]
    w2_p, b2_p = params["w2"], params["b2"]
    d_out = params["d_out"]

    B = x_nchw.shape[0]
    x_flat = x_nchw.reshape(B, -1)             # nn.Flatten(); stays f32, no pad copy
    d_in = x_flat.shape[1]
    assert w1_p.shape[0] == d_in, "params were prepared for a different input size"
    hid_p = w1_p.shape[1]
    d_out_p = w2_p.shape[1]

    out_itemsize = jnp.dtype(out_dtype).itemsize
    tb = _pick_batch_tile(B, d_in, hid_p, d_out_p, out_itemsize, batch_tile)
    num_tiles = pl.cdiv(B, tb)

    flops = 2 * B * (d_in * hid_p + hid_p * d_out_p)
    bytes_accessed = (x_flat.size * 4 + w1_p.size * 2 + w2_p.size * 2
                      + b1_p.size * 4 + b2_p.size * 4 + B * d_out_p * out_itemsize)

    out_p = pl.pallas_call(
        mlp_kernel,
        out_shape=jax.ShapeDtypeStruct((B, d_out_p), out_dtype),
        grid_spec=pltpu.PrefetchScalarGridSpec(
            num_scalar_prefetch=0,
            grid=(num_tiles,),
            in_specs=[
                # Activation tile streams over the batch axis (full feature dim).
                pl.BlockSpec((tb, d_in), lambda i: (i, 0)),
                # Weights / biases pinned in VMEM (constant index_map -> no re-DMA).
                pl.BlockSpec((d_in, hid_p), lambda i: (0, 0)),
                pl.BlockSpec((1, hid_p), lambda i: (0, 0)),
                pl.BlockSpec((hid_p, d_out_p), lambda i: (0, 0)),
                pl.BlockSpec((1, d_out_p), lambda i: (0, 0)),
            ],
            out_specs=pl.BlockSpec((tb, d_out_p), lambda i: (i, 0)),
        ),
        compiler_params=pltpu.CompilerParams(
            dimension_semantics=("parallel",),   # shard batch tiles over TCs (v7x)
        ),
        cost_estimate=pl.CostEstimate(
            flops=flops, transcendentals=0, bytes_accessed=bytes_accessed),
    )(x_flat, w1_p, b1_p, w2_p, b2_p)

    # Rows are already exact (no batch padding); only the padded lanes are cut.
    return out_p[:, :d_out]


if __name__ == "__main__":
    # Small shapes consistent with the module: batch=2, 1x16x16 "images",
    # input_shape = 1*16*16 = 256, hidden_units = 32, output_shape = 10.
    B, C, H, W = 2, 1, 16, 16
    D_IN, HIDDEN, D_OUT = C * H * W, 32, 10

    key = jax.random.PRNGKey(0)
    kx, k1, k2, k3, k4 = jax.random.split(key, 5)
    x = jax.random.normal(kx, (B, C, H, W), jnp.float32)

    # Deterministic init mimicking nn.Linear default (uniform +-1/sqrt(fan_in)).
    bound1 = 1.0 / (D_IN ** 0.5)
    bound2 = 1.0 / (HIDDEN ** 0.5)
    w1 = jax.random.uniform(k1, (D_IN, HIDDEN), jnp.float32, -bound1, bound1)
    b1 = jax.random.uniform(k2, (HIDDEN,), jnp.float32, -bound1, bound1)
    w2 = jax.random.uniform(k3, (HIDDEN, D_OUT), jnp.float32, -bound2, bound2)
    b2 = jax.random.uniform(k4, (D_OUT,), jnp.float32, -bound2, bound2)

    params = prepare_params(w1, b1, w2, b2)        # one-time padding / bf16 casts
    out = fashion_mnist_model_v1(x, params)
    out = jax.block_until_ready(out)

    # Pure-JAX reference using the same bf16-rounded matmul operands the kernel
    # sees (f32 accumulation), so tolerances can stay tight.
    xr = x.reshape(B, -1).astype(jnp.bfloat16).astype(jnp.float32)
    w1r = w1.astype(jnp.bfloat16).astype(jnp.float32)
    w2r = w2.astype(jnp.bfloat16).astype(jnp.float32)
    hid = jnp.maximum(xr @ w1r + b1[None, :], 0.0)
    ref = jnp.maximum(
        hid.astype(jnp.bfloat16).astype(jnp.float32) @ w2r + b2[None, :], 0.0)

    assert out.shape == (B, D_OUT)
    max_err = jnp.max(jnp.abs(out - ref))
    assert jnp.allclose(out, ref, atol=2e-3, rtol=2e-3), f"max abs err {max_err}"

    print("KERNEL_OK")
</pallas_src>

<mosaic_0001>
module attributes {stable_mosaic.version = 11 : i64} {
  func.func @mlp_kernel(%arg0: i32, %arg1: memref<2x256xf32, #tpu.memory_space<vmem>>, %arg2: memref<256x128xbf16, #tpu.memory_space<vmem>>, %arg3: memref<1x128xf32, #tpu.memory_space<vmem>>, %arg4: memref<128x128xbf16, #tpu.memory_space<vmem>>, %arg5: memref<1x128xf32, #tpu.memory_space<vmem>>, %arg6: memref<2x128xf32, #tpu.memory_space<vmem>>) attributes {dimension_semantics = [#tpu.dimension_semantics<parallel>], iteration_bounds = array<i64: 1>, scalar_prefetch = 0 : i64, scratch_operands = 0 : i64, tpu.core_type = #tpu.core_type<tc>, window_params = [{transform_indices = @transform_0, window_bounds = array<i64: 2, 256>}, {pipeline_mode = #tpu.pipeline_mode<synchronous>, transform_indices = @transform_1, window_bounds = array<i64: 256, 128>}, {pipeline_mode = #tpu.pipeline_mode<synchronous>, transform_indices = @transform_2, window_bounds = array<i64: 1, 128>}, {pipeline_mode = #tpu.pipeline_mode<synchronous>, transform_indices = @transform_3, window_bounds = array<i64: 128, 128>}, {pipeline_mode = #tpu.pipeline_mode<synchronous>, transform_indices = @transform_4, window_bounds = array<i64: 1, 128>}, {transform_indices = @transform_5, window_bounds = array<i64: 2, 128>}]} {
    %c0 = arith.constant 0 : index
    %c0_0 = arith.constant 0 : index
    %0 = vector.load %arg1[%c0, %c0_0] : memref<2x256xf32, #tpu.memory_space<vmem>>, vector<2x256xf32>
    %1 = arith.truncf %0 : vector<2x256xf32> to vector<2x256xbf16>
    %c0_1 = arith.constant 0 : index
    %c0_2 = arith.constant 0 : index
    %2 = vector.load %arg2[%c0_1, %c0_2] : memref<256x128xbf16, #tpu.memory_space<vmem>>, vector<256x128xbf16>
    %cst = arith.constant dense<0.000000e+00> : vector<2x128xf32>
    %3 = tpu.matmul %1, %2, %cst {dimension_numbers = #tpu.dot_dimension_numbers<[1], [0], [0], [1], [0, 0, 1, 1], [], []>} : vector<2x256xbf16>, vector<256x128xbf16>, vector<2x128xf32> -> vector<2x128xf32>
    %c0_3 = arith.constant 0 : index
    %c0_4 = arith.constant 0 : index
    %4 = vector.load %arg3[%c0_3, %c0_4] : memref<1x128xf32, #tpu.memory_space<vmem>>, vector<1x128xf32>
    %5 = vector.broadcast %4 : vector<1x128xf32> to vector<2x128xf32>
    %6 = arith.addf %3, %5 : vector<2x128xf32>
    %cst_5 = arith.constant 0.000000e+00 : f32
    %7 = vector.broadcast %cst_5 : f32 to vector<2x128xf32>
    %8 = arith.maximumf %6, %7 : vector<2x128xf32>
    %9 = arith.truncf %8 : vector<2x128xf32> to vector<2x128xbf16>
    %c0_6 = arith.constant 0 : index
    %c0_7 = arith.constant 0 : index
    %10 = vector.load %arg4[%c0_6, %c0_7] : memref<128x128xbf16, #tpu.memory_space<vmem>>, vector<128x128xbf16>
    %cst_8 = arith.constant dense<0.000000e+00> : vector<2x128xf32>
    %11 = tpu.matmul %9, %10, %cst_8 {dimension_numbers = #tpu.dot_dimension_numbers<[1], [0], [0], [1], [0, 0, 1, 1], [], []>} : vector<2x128xbf16>, vector<128x128xbf16>, vector<2x128xf32> -> vector<2x128xf32>
    %c0_9 = arith.constant 0 : index
    %c0_10 = arith.constant 0 : index
    %12 = vector.load %arg5[%c0_9, %c0_10] : memref<1x128xf32, #tpu.memory_space<vmem>>, vector<1x128xf32>
    %13 = vector.broadcast %12 : vector<1x128xf32> to vector<2x128xf32>
    %14 = arith.addf %11, %13 : vector<2x128xf32>
    %cst_11 = arith.constant 0.000000e+00 : f32
    %15 = vector.broadcast %cst_11 : f32 to vector<2x128xf32>
    %16 = arith.maximumf %14, %15 : vector<2x128xf32>
    %c0_12 = arith.constant 0 : index
    %c0_13 = arith.constant 0 : index
    %17 = vector.load %arg6[%c0_12, %c0_13] : memref<2x128xf32, #tpu.memory_space<vmem>>, vector<2x128xf32>
    tpu.vector_store %arg6[%c0_12, %c0_13], %16 {strides = array<i32>} : memref<2x128xf32, #tpu.memory_space<vmem>>, vector<2x128xf32>,
    return
  }
  func.func @transform_0(%arg0: i32) -> (i32, i32) {
    %c0_i32 = arith.constant 0 : i32
    %c0_i32_0 = arith.constant 0 : i32
    return %arg0, %c0_i32 : i32, i32
  }
  func.func @transform_1(%arg0: i32) -> (i32, i32) {
    %c0_i32 = arith.constant 0 : i32
    %c0_i32_0 = arith.constant 0 : i32
    %c0_i32_1 = arith.constant 0 : i32
    return %c0_i32, %c0_i32_0 : i32, i32
  }
  func.func @transform_2(%arg0: i32) -> (i32, i32) {
    %c0_i32 = arith.constant 0 : i32
    %c0_i32_0 = arith.constant 0 : i32
    %c0_i32_1 = arith.constant 0 : i32
    return %c0_i32, %c0_i32_0 : i32, i32
  }
  func.func @transform_3(%arg0: i32) -> (i32, i32) {
    %c0_i32 = arith.constant 0 : i32
    %c0_i32_0 = arith.constant 0 : i32
    %c0_i32_1 = arith.constant 0 : i32
    return %c0_i32, %c0_i32_0 : i32, i32
  }
  func.func @transform_4(%arg0: i32) -> (i32, i32) {
    %c0_i32 = arith.constant 0 : i32
    %c0_i32_0 = arith.constant 0 : i32
    %c0_i32_1 = arith.constant 0 : i32
    return %c0_i32, %c0_i32_0 : i32, i32
  }
  func.func @transform_5(%arg0: i32) -> (i32, i32) {
    %c0_i32 = arith.constant 0 : i32
    %c0_i32_0 = arith.constant 0 : i32
    return %arg0, %c0_i32 : i32, i32
  }
}

</mosaic_0001>

<bundles_post_ra>
// kernel: tpu_custom_call.1
= control target key start
LH: loop header
LB: loop body
LE: loop exit
PB: predicated region body
PF: predicated region fallthrough
CT: control target
= control target key end

     0   :  { %10 = vsyncpa [#allocation3], 0  ;;  %s642_s0 = inlined_call_operand.hbm [shape: f32[2,256], index: 0, kind: input, shape index: {}]   ;;  %s643_s1 = inlined_call_operand.hbm [shape: bf16[256,128], index: 1, kind: input, shape index: {}]   ;;  %s644_s2 = inlined_call_operand.vmem [shape: f32[1,128], index: 2, kind: input, shape index: {}]   ;;  %s645_s3 = inlined_call_operand.hbm [shape: bf16[128,128], index: 3, kind: input, shape index: {}]   ;;  %s646_s4 = inlined_call_operand.vmem [shape: f32[1,128], index: 4, kind: input, shape index: {}]   ;;  %s647_s5 = inlined_call_operand.hbm [shape: f32[2,128], index: 5, kind: output, shape index: {}]  }
   0x1   :  { %11 = vsyncpa [#allocation6], 0 }
   0x2   :  { %12 = vsyncpa [#allocation4], 0  ;;  %s577_s18 = smov [#allocation5]  }
   0x3   :  { %s28_s19 = sshll.u32 %s577_s18, 4  ;;  %s29_s19 = int_to_ptr.vmem [resolvable:$true] %s28_s19 }
   0x4   :  { %s499_s20 = scalar_lea.vmem %s29_s19, 2048  ;;  %p504_p1 = scmp.lt.s32.totalorder %s29_s19, %s29_s19 }
   0x5   :  { %p500_p0 = scmp.ne.s32.totalorder %s29_s19, %s499_s20  ;;  %p505_p2 = scmp.lt.s32.totalorder %s499_s20, %s499_s20 }
   0x7   :  { %p506_p3 = por %p505_p2, %p504_p1 }
   0x9   :  { %p507_p4 = pnand %p506_p3, %p500_p0 }
   0xb   :  { %510 = shalt.err (!%p507_p4)
}
   0xc   :  { %s578_s21 = smov 64   ;;  %s579_s22 = smov 4  }
   0xd   :  { %34 = dma.hbm_to_vmem [thread:$0]  %s643_s1, 2048, %s29_s19, [#allocation6], %s578_s21, %s578_s21, %s579_s22  }
   0xe   :  { %s580_s25 = smov [#allocation2]   ;;  %s581_s27 = smov [#allocation7]  }
   0xf   :  { %s19_s26 = sshll.u32 %s580_s25, 4  ;;  %s42_s28 = sshll.u32 %s581_s27, 4  ;;  %s20_s26 = int_to_ptr.vmem [resolvable:$true] %s19_s26  ;;  %s43_s28 = int_to_ptr.vmem [resolvable:$true] %s42_s28 }
  0x10   :  { %s519_s29 = scalar_lea.vmem %s20_s26, 64  ;;  %p524_p6 = scmp.lt.s32.totalorder %s20_s26, %s20_s26 }
  0x11   :  { %p520_p5 = scmp.ne.s32.totalorder %s20_s26, %s519_s29  ;;  %p525_p7 = scmp.lt.s32.totalorder %s519_s29, %s519_s29 }
  0x13   :  { %p526_p8 = por %p525_p7, %p524_p6 }
  0x15   :  { %p527_p9 = pnand %p526_p8, %p520_p5 }
  0x17   :  { %530 = shalt.err (!%p527_p9)
}
  0x18   :  { %22 = dma.hbm_to_vmem [thread:$0]  %s642_s0, 64, %s20_s26, [#allocation3]  }
  0x19   :  { %s539_s7 = scalar_lea.vmem %s43_s28, 1024  ;;  %p544_p11 = scmp.lt.s32.totalorder %s43_s28, %s43_s28 }
  0x1a   :  { %p540_p10 = scmp.ne.s32.totalorder %s43_s28, %s539_s7  ;;  %p545_p12 = scmp.lt.s32.totalorder %s539_s7, %s539_s7 }
  0x1c   :  { %p546_p13 = por %p545_p12, %p544_p11 }
  0x1e   :  { %p547_p0 = pnand %p546_p13, %p540_p10 }
  0x20   :  { %550 = shalt.err (!%p547_p0)
}
  0x21   :  { %48 = dma.hbm_to_vmem [thread:$0]  %s645_s3, 1024, %s43_s28, [#allocation6], %s578_s21, %s578_s21, %s579_s22  }
  0x22   :  { %571 = dma.done.wait [#allocation3], 64  }
  0x23   :  { %572 = vsyncadd [#allocation3], 4294967232 }
  0x24   :  { %573 = dma.done.wait [#allocation6], 3072  }
  0x25   :  { %574 = vsyncadd [#allocation6], 4294964224  ;;  %v582_v0 = vmov 0.0   ;;  %v467_v1 = vld [vmem:[#allocation5 + $0x78] sm:$0xff]   ;;  %v469_v3 = vld [vmem:[#allocation5 + $0x70] sm:$0xff]   ;;  %vm583_vm0 = vmmov 0  }
  0x26   :  { %439 = vmatprep.subr.bf16.mxu1 %v582_v0  ;;  %v468_v2 = vld [vmem:[#allocation5 + $0x38] sm:$0xff]   ;;  %408 = vmatprep.subr.bf16.mxu0 %v467_v1  ;;  %v470_v4 = vld [vmem:[#allocation5 + $0x30] sm:$0xff]   ;;  %v471_v5 = vld [vmem:[#allocation5 + $0x68] sm:$0xff]   ;;  %s584_s11 = smov [#allocation8]  }
  0x27   :  { %409 = vmatpush3.bf16.msra.mxu0 %v468_v2  ;;  %v472_v6 = vld [vmem:[#allocation5 + $0x28] sm:$0xff]   ;;  %v473_v7 = vld [vmem:[#allocation5 + $0x60] sm:$0xff]   ;;  %v475_v9 = vld [vmem:[#allocation5 + $0x58] sm:$0xff]   ;;  %455 = vmatprep.mubr.msk.bf16.mxu1 %vm583_vm0, %v582_v0  ;;  %s371_s12 = sshll.u32 %s584_s11, 4  ;;  %s372_s12 = int_to_ptr.vmem [resolvable:$true] %s371_s12 }
  0x28   :  { %410 = vmatprep.subr.bf16.mxu0 %v469_v3  ;;  %v474_v8 = vld [vmem:[#allocation5 + $0x20] sm:$0xff]   ;;  %v476_v10 = vld [vmem:[#allocation5 + $0x18] sm:$0xff]   ;;  %v477_v11 = vld [vmem:[#allocation5 + $0x50] sm:$0xff]   ;;  %p556_p2 = scmp.lt.s32.totalorder %s372_s12, %s372_s12 }
  0x29   :  { %v381_v12 = vld.sshfl [vmem:[#allocation2] sm:$0x33 pattern:$0x76325410]  ;;  %v478_v15 = vld [vmem:[#allocation5 + $0x10] sm:$0xff]   ;;  %v479_v18 = vld [vmem:[#allocation5 + $0x48] sm:$0xff]  }
  0x2a   :  { %v70_v13 = vcombine.high %v381_v12, %v381_v12  ;;  %v483_v14 = vld [vmem:[#allocation7 + $0x38] sm:$0xff]   ;;  %v484_v17 = vld [vmem:[#allocation7 + $0x30] sm:$0xff]   ;;  %v480_v19 = vld [vmem:[#allocation5 + $0x8] sm:$0xff]   ;;  %v73_v24 = vpack.c.bf16 %v381_v12, %v381_v12 }
  0x2b   :  { %411 = vmatpush3.bf16.msra.mxu0 %v470_v4  ;;  %440 = vmatpush3.bf16.msra.mxu1 %v483_v14  ;;  %v485_v20 = vld [vmem:[#allocation7 + $0x28] sm:$0xff]   ;;  %v481_v21 = vld [vmem:[#allocation5 + $0x40] sm:$0xff]   ;;  %v487_v25 = vld [vmem:[#allocation7 + $0x18] sm:$0xff]  }
  0x2c   :  { %412 = vmatprep.subr.bf16.mxu0 %v471_v5  ;;  %v74_v16 = vpack.c.bf16 %v70_v13, %v70_v13  ;;  %441 = vmatprep.subr.bf16.mxu1 %v582_v0  ;;  %v482_v22 = vld [vmem:[#allocation5] sm:$0xff]   ;;  %v488_v26 = vld [vmem:[#allocation7 + $0x10] sm:$0xff]   ;;  %v489_v27 = vld [vmem:[#allocation7 + $0x8] sm:$0xff]  }
  0x2d   :  { %v486_v23 = vld [vmem:[#allocation7 + $0x20] sm:$0xff]   ;;  %v382_v30 = vld [vmem:[%s644_s2] ss:$0 sm:$0xff]  ;;  %s551_s2 = scalar_lea.vmem %s372_s12, 32 }
  0x2e   :  { %242 = vmatprep.mubr.bf16.mxu0 %v74_v16  ;;  %v490_v28 = vld [vmem:[#allocation7] sm:$0xff]   ;;  %v399_v38 = vld [vmem:[%s646_s4] ss:$0 sm:$0xff]  ;;  %p552_p1 = scmp.ne.s32.totalorder %s372_s12, %s551_s2  ;;  %p557_p3 = scmp.lt.s32.totalorder %s551_s2, %s551_s2 }
  0x2f   :  { %413 = vmatpush3.bf16.msra.mxu0 %v472_v6  ;;  %442 = vmatpush3.bf16.msra.mxu1 %v484_v17 }
  0x30   :  { %414 = vmatprep.subr.bf16.mxu0 %v473_v7  ;;  %443 = vmatprep.subr.bf16.mxu1 %v582_v0  ;;  %p558_p4 = por %p557_p3, %p556_p2 }
  0x32   :  { %p559_p5 = pnand %p558_p4, %p552_p1 }
  0x33   :  { %415 = vmatpush3.bf16.msra.mxu0 %v474_v8  ;;  %444 = vmatpush3.bf16.msra.mxu1 %v485_v20 }
  0x34   :  { %416 = vmatprep.subr.bf16.mxu0 %v475_v9  ;;  %445 = vmatprep.subr.bf16.mxu1 %v582_v0 }
  0x37   :  { %417 = vmatpush3.bf16.msra.mxu0 %v476_v10  ;;  %446 = vmatpush3.bf16.msra.mxu1 %v486_v23 }
  0x38   :  { %418 = vmatprep.subr.bf16.mxu0 %v477_v11  ;;  %447 = vmatprep.subr.bf16.mxu1 %v582_v0 }
  0x3b   :  { %419 = vmatpush3.bf16.msra.mxu0 %v478_v15  ;;  %448 = vmatpush3.bf16.msra.mxu1 %v487_v25 }
  0x3c   :  { %420 = vmatprep.subr.bf16.mxu0 %v479_v18  ;;  %449 = vmatprep.subr.bf16.mxu1 %v582_v0 }
  0x3f   :  { %421 = vmatpush3.bf16.msra.mxu0 %v480_v19  ;;  %450 = vmatpush3.bf16.msra.mxu1 %v488_v26 }
  0x40   :  { %422 = vmatprep.subr.bf16.mxu0 %v481_v21  ;;  %451 = vmatprep.subr.bf16.mxu1 %v582_v0 }
  0x43   :  { %423 = vmatpush3.bf16.msra.mxu0 %v482_v22  ;;  %452 = vmatpush3.bf16.msra.mxu1 %v489_v27 }
  0x44   :  { %453 = vmatprep.subr.bf16.mxu1 %v582_v0 }
  0x46   :  { %243 = vmatmul.mubr.bf16.vlgmr.msra.gmra.mxu0 %v73_v24 }
  0x47   :  { %454 = vmatpush3.bf16.msra.mxu1 %v490_v28 }
 0x106   :  { %v424_v29 = vpop.f32.mrf.mxu0 }
 0x108   :  { %v425_v31 = vpop.f32.mrf.mxu0 }
 0x109   :  { %v426_v32 = vadd.f32 %v425_v31, %v424_v29 }
 0x10a   :  { %v427_v33 = vpop.f32.mrf.mxu0 }
 0x10b   :  { %v245_v34 = vadd.f32 %v426_v32, %v382_v30 }
 0x10c   :  { %v428_v35 = vpop.f32.mrf.mxu0 }
 0x10d   :  { %v250_v36 = vmax.f32 %v245_v34, 0.0 }
 0x10f   :  { %v251_v37 = vpack.c.bf16 %v250_v36, %v250_v36 }
 0x111   :  { %456 = vmatmul.mubr.bf16.vlgmr.msra.gmra.mxu1 %v251_v37 }
 0x1d1   :  { %v357_v39 = vpop.f32.mrf.mxu1 }
 0x1d2   :  { %v358_v40 = vadd.f32 %v399_v38, %v357_v39 }
 0x1d3   :  { %v457_v41 = vpop.f32.mrf.mxu1 }
 0x1d4   :  { %v363_v42 = vmax.f32 %v358_v40, 0.0 }
 0x1d5   :  { %v360_v43 = vpop.f32.mrf.mxu1 }
 0x1d6   :  { %364 = vst [vmem:[#allocation8] sm:$0x3] %v363_v42 }
 0x1d7   :  { %v458_v44 = vpop.f32.mrf.mxu1 }
 0x1d8   :  { %562 = shalt.err (!%p559_p5)
}
 0x1d9   :  { %374 = dma.vmem_to_hbm [thread:$0]  %s372_s12, 32, %s647_s5, [#allocation4]  }
 0x1da   :  { %575 = dma.done.wait [#allocation4], 32  }
 0x1db   :  { %576 = vsyncadd [#allocation4], 4294967264 }
 0x1dc   :  { %378 = vsyncpa [#allocation3], 1 }
 0x1dd   :  { %379 = vsyncpa [#allocation6], 1 }
 0x1de   :  { %380 = vsyncpa [#allocation4], 1 }

</bundles_post_ra>
